<compile_context>
chip_gen: v7x
topology: tpu7x:2x2x1
jax: 0.10.0
libtpu: 0.0.40
codegen_flags: <defaults>
</compile_context>

<pallas_src>
import functools

import jax
import jax.numpy as jnp
from jax import lax
from jax.experimental import pallas as pl
from jax.experimental.pallas import tpu as pltpu


# ----------------------------------------------------------------------------
# Kernel
# ----------------------------------------------------------------------------

def _wavelet_gc_kernel(*refs, inv_keep, mm_dtype, has_mask):
    """One grid step == one block of Bb graphs.

    a_ref    : (Bb, N, N)  max(A, I), binary, int8 (or mm dtype)
    phi_ref  : (Bb, N, N)  heat-wavelet matrix, mm dtype (bf16 / f32)
    xs_ref   : (Bb, 1, N)  f32, X summed over the feature axis (hoisted, exact)
    dinv_ref : (Bb, 1, N)  f32, D^-1/2 precomputed in the wrapper
    diag_ref : (1, N)      f32, diagonal wavelet filter as a lane-dense row
    mask_ref : (Bb, 1, N)  f32 dropout keep mask (only present if dropout > 0)
    o_ref    : (Bb, 1, N)  f32 output rows
    """
    if has_mask:
        a_ref, phi_ref, xs_ref, dinv_ref, diag_ref, mask_ref, o_ref = refs
    else:
        a_ref, phi_ref, xs_ref, dinv_ref, diag_ref, o_ref = refs
        mask_ref = None

    dinv = dinv_ref[...]                                   # (Bb,1,N) f32
    y = xs_ref[...] * dinv                                 # (Bb,1,N) f32

    # Binary A_sl shipped as int8 over HBM; cheap VPU upcast here, hidden under
    # the A/phi DMA stream (kernel is HBM-bound on the two (N,N) matrices).
    a = a_ref[...].astype(mm_dtype)                        # (Bb,N,N)

    # gc_row = D^-1/2 A_sl D^-1/2 @ sum_f X     (A_sl symmetric -> row matvec, MXU)
    # NOTE: if profiling shows the q=1 batched dot landing on the VPU/XLU path
    # instead of MXU weight-streaming, restructure to per-graph 2-D jnp.dot.
    z = jnp.einsum("bqn,bnm->bqm", y.astype(mm_dtype), a,
                   preferred_element_type=jnp.float32)     # (Bb,1,N) f32 accum
    gc = z * dinv                                          # (Bb,1,N) f32

    # w_row = phi @ gc_row                       (phi symmetric)
    w = jnp.einsum("bqn,bnm->bqm", gc.astype(mm_dtype), phi_ref[...],
                   preferred_element_type=jnp.float32)     # (Bb,1,N) f32

    out = diag_ref[...] * w                                # (1,N) broadcast, VPU
    if has_mask:
        out = out * mask_ref[...] * inv_keep               # training dropout
    o_ref[...] = out.astype(o_ref.dtype)


# ----------------------------------------------------------------------------
# Wrapper helpers: VMEM budget, grid-step rule, block-batch sizing, padding
# ----------------------------------------------------------------------------

def _vmem_budget_bytes():
    """~75% of per-core VMEM (v7x: 64 MiB -> ~48 MiB; v5e/v6e: 128 MiB -> ~96 MiB)."""
    cap = None
    try:
        cap = int(pltpu.get_tpu_info().vmem_capacity_bytes)
    except Exception:
        cap = None
    if not cap:
        try:
            kind = jax.devices()[0].device_kind.lower()
            cap = (64 << 20) if "v7" in kind else (128 << 20)
        except Exception:
            cap = 64 << 20
    cap = max(32 << 20, min(cap, 128 << 20))
    return (cap * 3) // 4


def _min_grid_steps():
    """>= ~8 pipelined steps per TensorCore so DMA prologue/epilogue amortizes;
    v7x shards the 'parallel' grid axis across 2 TCs -> ask for 16 total."""
    try:
        if "v7" in jax.devices()[0].device_kind.lower():
            return 16
    except Exception:
        pass
    return 8


def _pick_block_batch(B, Np, a_bytes, mm_bytes, n_rows, budget,
                      block_batch=None, min_steps=8):
    """Graphs per grid step.  Hard cap: double-buffered blocks fit the VMEM
    budget.  Soft: keep >= min_steps grid steps, but keep per-step DMA multi-MiB."""
    if block_batch is not None:
        return max(1, min(int(block_batch), B))
    per_graph_vmem = (
        2 * Np * Np * a_bytes                                  # A_sl block, double-buffered
        + 2 * Np * Np * mm_bytes                               # phi block, double-buffered
        + (Np * Np * mm_bytes if a_bytes != mm_bytes else 0)   # in-kernel A upcast temp
        + 2 * n_rows * Np * 4                                  # row-vector in/out blocks (f32)
        + 8 * Np * 4                                           # y/z/gc/w intermediates + slack
    )
    bb_vmem = max(1, budget // max(per_graph_vmem, 1))
    stream_per_graph = Np * Np * (a_bytes + mm_bytes) + n_rows * Np * 4
    bb_dma_floor = max(1, ((2 << 20) + stream_per_graph - 1) // stream_per_graph)
    bb_steps = max(1, B // min_steps)
    return max(1, min(bb_vmem, B, max(bb_dma_floor, bb_steps)))


def _round_up(x, m):
    return ((x + m - 1) // m) * m


def _pad_axis(x, axis, target):
    if x.shape[axis] == target:
        return x
    widths = [(0, 0)] * x.ndim
    widths[axis] = (0, target - x.shape[axis])
    return jnp.pad(x, widths)


# ----------------------------------------------------------------------------
# Public wrapper
# ----------------------------------------------------------------------------

def wavelet_graph_conv(A, X, phi, diag_filter, *, dropout_p=0.0, key=None,
                       block_batch=None, matmul_dtype=jnp.bfloat16,
                       a_dtype=jnp.int8):
    """Pallas wrapper. Returns (B, N) filtered node features (post feature-sum)."""
    B, N, _ = X.shape
    assert A.shape == (B, N, N) and phi.shape == (B, N, N)
    assert diag_filter.shape == (N, 1)

    # ---- wrapper-side precompute (fused XLA HBM passes) ---------------------
    # Exact hoist of the trailing feature-sum through the linear chain.
    xs = jnp.sum(X.astype(jnp.float32), axis=-1)[:, None, :]           # (B,1,N)

    # add_remaining_self_loops (binary A) + symmetric normalization, hoisted out
    # of the kernel (NOTE: assumes binary, symmetric adjacency, as in the module).
    eye = jnp.eye(N, dtype=jnp.float32)
    a_sl = jnp.maximum(A.astype(jnp.float32), eye[None])               # binary, self-loops
    deg = jnp.sum(a_sl, axis=2)                                         # (B,N)
    dinv = jnp.where(deg > 0, lax.rsqrt(deg), 0.0)[:, None, :]          # (B,1,N) f32

    a_lo = a_sl.astype(a_dtype)            # binary -> int8 over HBM (half of bf16)
    phi_lo = phi.astype(matmul_dtype)      # bf16 operands, f32 accumulation in-kernel
    diag_row = diag_filter.reshape(1, N).astype(jnp.float32)            # lane-dense

    dropout_p = float(dropout_p)
    has_mask = dropout_p > 0.0
    if has_mask:
        if key is None:
            key = jax.random.PRNGKey(0)
        mask = jax.random.bernoulli(key, 1.0 - dropout_p, (B, 1, N)).astype(jnp.float32)
        inv_keep = 1.0 / (1.0 - dropout_p)
    else:
        mask = None
        inv_keep = 1.0

    # ---- lane alignment ------------------------------------------------------
    # Zero-pad the node axis to a multiple of 128 so loads/stores are lane-dense
    # (padded rows/cols are zero -> exact; padded outputs sliced off below).
    # TODO(synk): for N << 128, pack ceil(128/N) graphs along the lane axis
    # instead of leaving most of every vreg row empty.
    Np = _round_up(N, 128) if N >= 128 else N
    if Np != N:
        a_lo = _pad_axis(_pad_axis(a_lo, 1, Np), 2, Np)
        phi_lo = _pad_axis(_pad_axis(phi_lo, 1, Np), 2, Np)
        xs = _pad_axis(xs, 2, Np)
        dinv = _pad_axis(dinv, 2, Np)
        diag_row = _pad_axis(diag_row, 1, Np)
        if has_mask:
            mask = _pad_axis(mask, 2, Np)

    # ---- block-batch sizing / ragged-B padding -------------------------------
    budget = _vmem_budget_bytes()
    a_bytes = jnp.dtype(a_dtype).itemsize
    mm_bytes = jnp.dtype(matmul_dtype).itemsize
    n_rows = 4 if has_mask else 3                    # xs, dinv, out (+ mask)
    Bb = _pick_block_batch(B, Np, a_bytes, mm_bytes, n_rows, budget,
                           block_batch=block_batch, min_steps=_min_grid_steps())
    Bp = _round_up(B, Bb)
    if Bp != B:                                      # awkward B: zero-pad graphs
        a_lo = _pad_axis(a_lo, 0, Bp)
        phi_lo = _pad_axis(phi_lo, 0, Bp)
        xs = _pad_axis(xs, 0, Bp)
        dinv = _pad_axis(dinv, 0, Bp)
        if has_mask:
            mask = _pad_axis(mask, 0, Bp)
    grid = (Bp // Bb,)

    in_specs = [
        pl.BlockSpec((Bb, Np, Np), lambda b: (b, 0, 0)),   # A_sl (int8)
        pl.BlockSpec((Bb, Np, Np), lambda b: (b, 0, 0)),   # phi
        pl.BlockSpec((Bb, 1, Np), lambda b: (b, 0, 0)),    # sum_f X
        pl.BlockSpec((Bb, 1, Np), lambda b: (b, 0, 0)),    # D^-1/2
        pl.BlockSpec((1, Np), lambda b: (0, 0)),           # diag filter (shared)
    ]
    inputs = [a_lo, phi_lo, xs, dinv, diag_row]
    if has_mask:
        in_specs.append(pl.BlockSpec((Bb, 1, Np), lambda b: (b, 0, 0)))
        inputs.append(mask)

    kernel = functools.partial(_wavelet_gc_kernel, inv_keep=inv_keep,
                               mm_dtype=matmul_dtype, has_mask=has_mask)

    # TODO(synk): when 2*(A+phi)*Np^2*bytes exceeds `budget` even at Bb=1
    # (Np >~ 2.5k on v7x / ~3.6k on v5e/v6e at bf16), add a second grid axis
    # tiling the output-node dim of A_sl/phi into (tm~512, Np) slabs, keeping
    # the row vectors in VMEM scratch and marking that axis "arbitrary".
    out = pl.pallas_call(
        kernel,
        out_shape=jax.ShapeDtypeStruct((Bp, 1, Np), jnp.float32),
        grid_spec=pltpu.PrefetchScalarGridSpec(
            num_scalar_prefetch=0,
            grid=grid,
            in_specs=in_specs,
            out_specs=pl.BlockSpec((Bb, 1, Np), lambda b: (b, 0, 0)),
        ),
        compiler_params=pltpu.CompilerParams(
            dimension_semantics=("parallel",),
            vmem_limit_bytes=int(budget),
        ),
    )(*inputs)
    return out[:B, 0, :N]


# ----------------------------------------------------------------------------
# Glue: heat-wavelet construction (pygsp.filters.Heat frame approximation) and
# a pure-JAX reference for correctness checking.
# ----------------------------------------------------------------------------

def heat_wavelet(a_dense, scales):
    """sum_s  U exp(-s * lambda / lmax) U^T  on the combinatorial Laplacian."""
    # TODO(synk): pygsp.filters.Heat.compute_frame / networkx graph construction
    # has no Pallas equivalent; approximated here with an eigendecomposition in glue.
    d = jnp.sum(a_dense, axis=1)
    L = jnp.diag(d) - a_dense
    lam, U = jnp.linalg.eigh(L)
    lmax = jnp.max(lam)
    g = jnp.zeros_like(lam)
    for s in scales:
        g = g + jnp.exp(-s * lam / lmax)
    return (U * g[None, :]) @ U.T


def reference(A, X, phi, diag):
    """Pure-JAX reference of the forward pass (dropout disabled)."""
    N = A.shape[1]
    eye = jnp.eye(N, dtype=A.dtype)
    a_sl = jnp.maximum(A, eye[None])
    deg = jnp.sum(a_sl, axis=2)
    dinv = jnp.where(deg > 0, deg ** -0.5, 0.0)
    a_norm = dinv[:, :, None] * a_sl * dinv[:, None, :]
    gc = jnp.einsum("bij,bjf->bif", a_norm, X)
    waxy = jnp.einsum("bij,bjf->bif", phi, gc)
    return diag[None, :, 0] * jnp.sum(waxy, axis=-1)


if __name__ == "__main__":
    B, N, Fdim = 2, 16, 32      # ncount = 16, feature dim = 32 (nclass unused by forward)
    scales = (0.5, 1.0)
    dropout = 0.5

    key = jax.random.PRNGKey(0)
    k_adj, k_x, k_w, k_do = jax.random.split(key, 4)

    # deterministic random symmetric binary adjacency, zero diagonal
    upper = (jax.random.uniform(k_adj, (B, N, N)) < 0.3).astype(jnp.float32)
    upper = jnp.triu(upper, k=1)
    A = upper + jnp.transpose(upper, (0, 2, 1))

    X = jax.random.normal(k_x, (B, N, Fdim), dtype=jnp.float32)

    # diag_weight_filter ~ U(0.9, 1.1), shape (ncount, 1) as in init_parameters()
    diag_filter = jax.random.uniform(
        k_w, (N, 1), minval=0.9, maxval=1.1, dtype=jnp.float32)

    phi = jax.vmap(lambda a: heat_wavelet(a, scales))(A).astype(jnp.float32)

    ref = reference(A, X, phi, diag_filter)

    # 1) exact-algebra check: int8 A + f32 matmul path must match the reference tightly.
    out_f32 = wavelet_graph_conv(A, X, phi, diag_filter, dropout_p=0.0,
                                 matmul_dtype=jnp.float32)
    out_f32 = jax.block_until_ready(out_f32)
    if not bool(jnp.allclose(out_f32, ref, rtol=1e-3, atol=1e-3)):
        raise AssertionError(
            f"f32 kernel mismatch vs reference, max abs diff = {jnp.max(jnp.abs(out_f32 - ref))}")

    # 2) default path (int8 A, bf16 phi / activations, f32 accumulate): norm-relative check.
    out_bf16 = wavelet_graph_conv(A, X, phi, diag_filter, dropout_p=0.0)
    out_bf16 = jax.block_until_ready(out_bf16)
    rel_err = float(jnp.max(jnp.abs(out_bf16 - ref)) / (jnp.max(jnp.abs(ref)) + 1e-6))
    if rel_err > 5e-2:
        raise AssertionError(f"bf16 kernel mismatch vs reference, rel err = {rel_err}")

    # 3) dropout path (keep-mask from jax.random, applied in-kernel).
    out_do = wavelet_graph_conv(A, X, phi, diag_filter, dropout_p=dropout, key=k_do)
    out_do = jax.block_until_ready(out_do)
    assert out_do.shape == (B, N)
    assert int(jnp.sum(out_do == 0.0)) > 0   # some nodes dropped at p=0.5

    print("KERNEL_OK")
</pallas_src>

<mosaic_0001>
module attributes {stable_mosaic.version = 11 : i64} {
  func.func @_wavelet_gc_kernel(%arg0: i32, %arg1: memref<2x16x16xi8, #tpu.memory_space<vmem>>, %arg2: memref<2x16x16xf32, #tpu.memory_space<vmem>>, %arg3: memref<2x1x16xf32, #tpu.memory_space<vmem>>, %arg4: memref<2x1x16xf32, #tpu.memory_space<vmem>>, %arg5: memref<1x16xf32, #tpu.memory_space<vmem>>, %arg6: memref<2x1x16xf32, #tpu.memory_space<vmem>>) attributes {dimension_semantics = [#tpu.dimension_semantics<parallel>], iteration_bounds = array<i64: 1>, scalar_prefetch = 0 : i64, scratch_operands = 0 : i64, tpu.core_type = #tpu.core_type<tc>, window_params = [{transform_indices = @transform_0, window_bounds = array<i64: 2, 16, 16>}, {transform_indices = @transform_1, window_bounds = array<i64: 2, 16, 16>}, {transform_indices = @transform_2, window_bounds = array<i64: 2, 1, 16>}, {transform_indices = @transform_3, window_bounds = array<i64: 2, 1, 16>}, {pipeline_mode = #tpu.pipeline_mode<synchronous>, transform_indices = @transform_4, window_bounds = array<i64: 1, 16>}, {transform_indices = @transform_5, window_bounds = array<i64: 2, 1, 16>}]} {
    %c0 = arith.constant 0 : index
    %c0_0 = arith.constant 0 : index
    %c0_1 = arith.constant 0 : index
    %0 = vector.load %arg4[%c0, %c0_0, %c0_1] : memref<2x1x16xf32, #tpu.memory_space<vmem>>, vector<2x1x16xf32>
    %c0_2 = arith.constant 0 : index
    %c0_3 = arith.constant 0 : index
    %c0_4 = arith.constant 0 : index
    %1 = vector.load %arg3[%c0_2, %c0_3, %c0_4] : memref<2x1x16xf32, #tpu.memory_space<vmem>>, vector<2x1x16xf32>
    %2 = arith.mulf %1, %0 : vector<2x1x16xf32>
    %c0_5 = arith.constant 0 : index
    %c0_6 = arith.constant 0 : index
    %c0_7 = arith.constant 0 : index
    %3 = vector.load %arg1[%c0_5, %c0_6, %c0_7] : memref<2x16x16xi8, #tpu.memory_space<vmem>>, vector<2x16x16xi8>
    %4 = arith.sitofp %3 : vector<2x16x16xi8> to vector<2x16x16xf32>
    "tpu.trace_start"() <{level = 10 : i32, message = "bqn,bnm->bqm"}> : () -> ()
    %cst = arith.constant dense<0.000000e+00> : vector<2x1x16xf32>
    %5 = tpu.matmul %2, %4, %cst {dimension_numbers = #tpu.dot_dimension_numbers<[2], [1], [1], [2], [0, 0, 0, 1, 1, 2], [0], [0]>} : vector<2x1x16xf32>, vector<2x16x16xf32>, vector<2x1x16xf32> -> vector<2x1x16xf32>
    "tpu.trace_stop"() : () -> ()
    %6 = arith.mulf %5, %0 : vector<2x1x16xf32>
    %c0_8 = arith.constant 0 : index
    %c0_9 = arith.constant 0 : index
    %c0_10 = arith.constant 0 : index
    %7 = vector.load %arg2[%c0_8, %c0_9, %c0_10] : memref<2x16x16xf32, #tpu.memory_space<vmem>>, vector<2x16x16xf32>
    "tpu.trace_start"() <{level = 10 : i32, message = "bqn,bnm->bqm"}> : () -> ()
    %cst_11 = arith.constant dense<0.000000e+00> : vector<2x1x16xf32>
    %8 = tpu.matmul %6, %7, %cst_11 {dimension_numbers = #tpu.dot_dimension_numbers<[2], [1], [1], [2], [0, 0, 0, 1, 1, 2], [0], [0]>} : vector<2x1x16xf32>, vector<2x16x16xf32>, vector<2x1x16xf32> -> vector<2x1x16xf32>
    "tpu.trace_stop"() : () -> ()
    %c0_12 = arith.constant 0 : index
    %c0_13 = arith.constant 0 : index
    %9 = vector.load %arg5[%c0_12, %c0_13] : memref<1x16xf32, #tpu.memory_space<vmem>>, vector<1x16xf32>
    %10 = vector.shape_cast %9 : vector<1x16xf32> to vector<1x1x16xf32>
    %11 = vector.broadcast %10 : vector<1x1x16xf32> to vector<2x1x16xf32>
    %12 = arith.mulf %11, %8 : vector<2x1x16xf32>
    %c0_14 = arith.constant 0 : index
    %c0_15 = arith.constant 0 : index
    %c0_16 = arith.constant 0 : index
    %13 = vector.load %arg6[%c0_14, %c0_15, %c0_16] : memref<2x1x16xf32, #tpu.memory_space<vmem>>, vector<2x1x16xf32>
    tpu.vector_store %arg6[%c0_14, %c0_15, %c0_16], %12 {strides = array<i32>} : memref<2x1x16xf32, #tpu.memory_space<vmem>>, vector<2x1x16xf32>,
    return
  }
  func.func @transform_0(%arg0: i32) -> (i32, i32, i32) {
    %c0_i32 = arith.constant 0 : i32
    %c0_i32_0 = arith.constant 0 : i32
    %c0_i32_1 = arith.constant 0 : i32
    return %arg0, %c0_i32, %c0_i32_0 : i32, i32, i32
  }
  func.func @transform_1(%arg0: i32) -> (i32, i32, i32) {
    %c0_i32 = arith.constant 0 : i32
    %c0_i32_0 = arith.constant 0 : i32
    %c0_i32_1 = arith.constant 0 : i32
    return %arg0, %c0_i32, %c0_i32_0 : i32, i32, i32
  }
  func.func @transform_2(%arg0: i32) -> (i32, i32, i32) {
    %c0_i32 = arith.constant 0 : i32
    %c0_i32_0 = arith.constant 0 : i32
    %c0_i32_1 = arith.constant 0 : i32
    return %arg0, %c0_i32, %c0_i32_0 : i32, i32, i32
  }
  func.func @transform_3(%arg0: i32) -> (i32, i32, i32) {
    %c0_i32 = arith.constant 0 : i32
    %c0_i32_0 = arith.constant 0 : i32
    %c0_i32_1 = arith.constant 0 : i32
    return %arg0, %c0_i32, %c0_i32_0 : i32, i32, i32
  }
  func.func @transform_4(%arg0: i32) -> (i32, i32) {
    %c0_i32 = arith.constant 0 : i32
    %c0_i32_0 = arith.constant 0 : i32
    %c0_i32_1 = arith.constant 0 : i32
    return %c0_i32, %c0_i32_0 : i32, i32
  }
  func.func @transform_5(%arg0: i32) -> (i32, i32, i32) {
    %c0_i32 = arith.constant 0 : i32
    %c0_i32_0 = arith.constant 0 : i32
    %c0_i32_1 = arith.constant 0 : i32
    return %arg0, %c0_i32, %c0_i32_0 : i32, i32, i32
  }
}

</mosaic_0001>

<bundles_post_ra>
// kernel: tpu_custom_call.1
= control target key start
LH: loop header
LB: loop body
LE: loop exit
PB: predicated region body
PF: predicated region fallthrough
CT: control target
= control target key end

     0   :  { %10 = vsyncpa [#allocation3], 0  ;;  %s785_s0 = inlined_call_operand.hbm [shape: s8[2,16,16], index: 0, kind: input, shape index: {}]   ;;  %s786_s1 = inlined_call_operand.hbm [shape: f32[2,16,16], index: 1, kind: input, shape index: {}]   ;;  %s787_s2 = inlined_call_operand.hbm [shape: f32[2,1,16], index: 2, kind: input, shape index: {}]   ;;  %s788_s3 = inlined_call_operand.hbm [shape: f32[2,1,16], index: 3, kind: input, shape index: {}]   ;;  %s789_s4 = inlined_call_operand.hbm [shape: f32[1,16], index: 4, kind: input, shape index: {}]   ;;  %s790_s5 = inlined_call_operand.hbm [shape: f32[2,1,16], index: 5, kind: output, shape index: {}]  }
   0x1   :  { %11 = vsyncpa [#allocation6], 0 }
   0x2   :  { %12 = vsyncpa [#allocation9], 0 }
   0x3   :  { %13 = vsyncpa [#allocation4], 0  ;;  %s651_s18 = smov [#allocation5]   ;;  %s511_s22 = scalar_lea.hbm %s786_s1, 512 }
   0x4   :  { %s31_s19 = sshll.u32 %s651_s18, 4  ;;  %p512_p0 = scmp.ne.s32.totalorder %s786_s1, %s511_s22  ;;  %s32_s19 = int_to_ptr.vmem [resolvable:$true] %s31_s19 }
   0x5   :  { %p515_p1 = scmp.lt.u32.totalorder %s511_s22, %s786_s1 }
   0x7   :  { %p517_p2 = pnand %p515_p1, %p512_p0 }
   0x9   :  { %520 = shalt.err (!%p517_p2)
}
   0xa   :  { %s521_s27 = scalar_lea.vmem %s32_s19, 512  ;;  %p526_p4 = scmp.lt.s32.totalorder %s32_s19, %s32_s19 }
   0xb   :  { %p522_p3 = scmp.ne.s32.totalorder %s32_s19, %s521_s27  ;;  %p527_p5 = scmp.lt.s32.totalorder %s521_s27, %s521_s27 }
   0xd   :  { %p528_p6 = por %p527_p5, %p526_p4 }
   0xf   :  { %p529_p7 = pnand %p528_p6, %p522_p3 }
  0x11   :  { %532 = shalt.err (!%p529_p7)
}
  0x12   :  { %s652_s28 = smov 128   ;;  %s653_s29 = smov 8  }
  0x13   :  { %37 = dma.hbm_to_vmem [thread:$0]  %s786_s1, 512, %s32_s19, [#allocation6], %s652_s28, %s652_s28, %s653_s29  }
  0x14   :  { %s654_s7 = smov [#allocation8]   ;;  %s655_s9 = smov [#allocation2]  }
  0x15   :  { %s55_s8 = sshll.u32 %s654_s7, 4  ;;  %s19_s10 = sshll.u32 %s655_s9, 4  ;;  %s56_s8 = int_to_ptr.vmem [resolvable:$true] %s55_s8  ;;  %s20_s10 = int_to_ptr.vmem [resolvable:$true] %s19_s10 }
  0x16   :  { %s533_s13 = scalar_lea.hbm %s788_s3, 32 }
  0x17   :  { %p534_p8 = scmp.ne.s32.totalorder %s788_s3, %s533_s13  ;;  %p537_p9 = scmp.lt.u32.totalorder %s533_s13, %s788_s3 }
  0x19   :  { %p539_p10 = pnand %p537_p9, %p534_p8 }
  0x1b   :  { %542 = shalt.err (!%p539_p10)
}
  0x1c   :  { %s543_s1 = scalar_lea.vmem %s56_s8, 32  ;;  %p548_p12 = scmp.lt.s32.totalorder %s56_s8, %s56_s8 }
  0x1d   :  { %p544_p11 = scmp.ne.s32.totalorder %s56_s8, %s543_s1  ;;  %p549_p13 = scmp.lt.s32.totalorder %s543_s1, %s543_s1 }
  0x1f   :  { %p550_p0 = por %p549_p13, %p548_p12 }
  0x21   :  { %p551_p1 = pnand %p550_p0, %p544_p11 }
  0x23   :  { %554 = shalt.err (!%p551_p1)
}
  0x24   :  { %s656_s18 = smov 16   ;;  %s657_s19 = smov 1  }
  0x25   :  { %61 = dma.hbm_to_vmem [thread:$0]  %s788_s3, 32, %s56_s8, [#allocation9], %s656_s18, %s656_s18, %s657_s19  }
  0x26   :  { %s555_s24 = scalar_lea.hbm %s785_s0, 128 }
  0x27   :  { %p556_p2 = scmp.ne.s32.totalorder %s785_s0, %s555_s24  ;;  %p559_p3 = scmp.lt.u32.totalorder %s555_s24, %s785_s0 }
  0x29   :  { %p561_p4 = pnand %p559_p3, %p556_p2 }
  0x2b   :  { %564 = shalt.err (!%p561_p4)
}
  0x2c   :  { %s565_s29 = scalar_lea.vmem %s20_s10, 128  ;;  %p570_p6 = scmp.lt.s32.totalorder %s20_s10, %s20_s10 }
  0x2d   :  { %p566_p5 = scmp.ne.s32.totalorder %s20_s10, %s565_s29  ;;  %p571_p7 = scmp.lt.s32.totalorder %s565_s29, %s565_s29 }
  0x2f   :  { %p572_p8 = por %p571_p7, %p570_p6 }
  0x31   :  { %p573_p9 = pnand %p572_p8, %p566_p5 }
  0x33   :  { %576 = shalt.err (!%p573_p9)
}
  0x34   :  { %s658_s3 = smov 32   ;;  %s659_s30 = smov 2  }
  0x35   :  { %25 = dma.hbm_to_vmem [thread:$0]  %s785_s0, 128, %s20_s10, [#allocation3], %s658_s3, %s658_s3, %s659_s30  }
  0x36   :  { %s660_s8 = smov [#allocation7]   ;;  %s661_s11 = smov [#allocation10]  }
  0x37   :  { %s43_s9 = sshll.u32 %s660_s8, 4  ;;  %s68_s12 = sshll.u32 %s661_s11, 4  ;;  %s44_s9 = int_to_ptr.vmem [resolvable:$true] %s43_s9  ;;  %s69_s12 = int_to_ptr.vmem [resolvable:$true] %s68_s12 }
  0x38   :  { %s577_s15 = scalar_lea.hbm %s787_s2, 32 }
  0x39   :  { %p578_p10 = scmp.ne.s32.totalorder %s787_s2, %s577_s15  ;;  %p581_p11 = scmp.lt.u32.totalorder %s577_s15, %s787_s2 }
  0x3b   :  { %p583_p12 = pnand %p581_p11, %p578_p10 }
  0x3d   :  { %586 = shalt.err (!%p583_p12)
}
  0x3e   :  { %s587_s0 = scalar_lea.vmem %s44_s9, 32  ;;  %p592_p0 = scmp.lt.s32.totalorder %s44_s9, %s44_s9 }
  0x3f   :  { %p588_p13 = scmp.ne.s32.totalorder %s44_s9, %s587_s0  ;;  %p593_p1 = scmp.lt.s32.totalorder %s587_s0, %s587_s0 }
  0x41   :  { %p594_p2 = por %p593_p1, %p592_p0 }
  0x43   :  { %p595_p3 = pnand %p594_p2, %p588_p13 }
  0x45   :  { %598 = shalt.err (!%p595_p3)
}
  0x46   :  { %49 = dma.hbm_to_vmem [thread:$0]  %s787_s2, 32, %s44_s9, [#allocation6], %s656_s18, %s656_s18, %s657_s19  }
  0x47   :  { %s599_s24 = scalar_lea.hbm %s789_s4, 16 }
  0x48   :  { %p600_p4 = scmp.ne.s32.totalorder %s789_s4, %s599_s24  ;;  %p603_p5 = scmp.lt.u32.totalorder %s599_s24, %s789_s4 }
  0x4a   :  { %p605_p6 = pnand %p603_p5, %p600_p4 }
  0x4c   :  { %608 = shalt.err (!%p605_p6)
}
  0x4d   :  { %s609_s29 = scalar_lea.vmem %s69_s12, 16  ;;  %s613_s3 = scalar_lea.vmem %s69_s12, 32 }
  0x4e   :  { %p610_p7 = scmp.ne.s32.totalorder %s69_s12, %s609_s29  ;;  %p614_p8 = scmp.lt.s32.totalorder %s69_s12, %s69_s12 }
  0x4f   :  { %p615_p9 = scmp.lt.s32.totalorder %s613_s3, %s609_s29 }
  0x51   :  { %p616_p10 = por %p615_p9, %p614_p8 }
  0x53   :  { %p617_p11 = pnand %p616_p10, %p610_p7 }
  0x55   :  { %620 = shalt.err (!%p617_p11)
}
  0x56   :  { %71 = dma.hbm_to_vmem [thread:$0]  %s789_s4, 16, %s69_s12, [#allocation9]  }
  0x57   :  { %643 = dma.done.wait [#allocation3], 128  }
  0x58   :  { %644 = vsyncadd [#allocation3], 4294967168 }
  0x59   :  { %645 = dma.done.wait [#allocation6], 544  }
  0x5a   :  { %646 = vsyncadd [#allocation6], 4294966752 }
  0x5b   :  { %647 = dma.done.wait [#allocation9], 48  }
  0x5c   :  { %648 = vsyncadd [#allocation9], 4294967248  ;;  %v662_v0 = vmov 0.0|0.0   ;;  %vm663_vm0 = vmmov 0   ;;  %v664_v1 = vmov 0.0   ;;  %v434_v2 = vld [vmem:[#allocation2] sm:$0xff]  }
  0x5d   :  { %481 = vmatprep.subr.bf16.mxu0 %v662_v0  ;;  %484 = vmatprep.subr.bf16.mxu1 %v662_v0  ;;  %v87_v3 = vld [vmem:[#allocation8] sm:$0x1]  ;;  %v89_v4 = vld [vmem:[#allocation7] sm:$0x1]  ;;  %v494_v5 = vunpack.c.l.s8.bf16 %v434_v2  ;;  %v495_v6 = vunpack.c.h.s8.bf16 %v434_v2  ;;  %v88_v7 = vld [vmem:[#allocation8 + $0x1] sm:$0x1] }
  0x5e   :  { %457 = vmatprep.mubr.msk.f32.mxu0 %vm663_vm0, %v664_v1  ;;  %464 = vmatprep.mubr.msk.f32.mxu1 %vm663_vm0, %v664_v1  ;;  %v90_v8 = vld [vmem:[#allocation7 + $0x1] sm:$0x1]  ;;  %v91_v10 = vmul.f32 %v89_v4, %v87_v3  ;;  %v255_v12 = vld [vmem:[#allocation5 + $0x8] sm:$0xff]  ;;  %v256_v13 = vld [vmem:[#allocation5 + $0x10] sm:$0xff]  ;;  %vm105_vm1 = vcmask 130048   ;;  %s665_s4 = smov [#allocation11]  }
  0x5f   :  { %v254_v9 = vld [vmem:[#allocation5] sm:$0xff]  ;;  %v92_v11 = vmul.f32 %v90_v8, %v88_v7  ;;  %v257_v14 = vld [vmem:[#allocation5 + $0x18] sm:$0xff]  ;;  %483 = vmatpush3.bf16.msra.mxu0 %v494_v5  ;;  %486 = vmatpush3.bf16.msra.mxu1 %v495_v6  ;;  %s415_s6 = sshll.u32 %s665_s4, 4  ;;  %vm407_vm2 = vcmask 122880   ;;  %s416_s6 = int_to_ptr.vmem [resolvable:$true] %s415_s6 }
  0x60   :  { %v488_v15 = vpack.c.bf16 %v255_v12, %v254_v9  ;;  %v491_v16 = vpack.c.bf16 %v257_v14, %v256_v13  ;;  %487 = vmatprep.subr.bf16.mxu0 %v662_v0  ;;  %490 = vmatprep.subr.bf16.mxu1 %v662_v0  ;;  %v404_v23 = vld [vmem:[#allocation10] sm:$0x1]  ;;  %s621_s7 = scalar_lea.vmem %s416_s6, 32  ;;  %p626_p13 = scmp.lt.s32.totalorder %s416_s6, %s416_s6 }
  0x61   :  { %p622_p12 = scmp.ne.s32.totalorder %s416_s6, %s621_s7  ;;  %p627_p0 = scmp.lt.s32.totalorder %s621_s7, %s621_s7 }
  0x62   :  { %458 = vmatmul.mubr.msk.f32.vlgmr.msra.gmra.mrb[0].mxu0 %vm105_vm1, %v91_v10  ;;  %465 = vmatmul.mubr.msk.f32.vlgmr.msra.gmra.mrb[0].mxu1 %vm105_vm1, %v92_v11 }
  0x63   :  { %489 = vmatpush3.bf16.msra.mxu0 %v488_v15  ;;  %492 = vmatpush3.bf16.msra.mxu1 %v491_v16  ;;  %p628_p1 = por %p627_p0, %p626_p13 }
  0x64   :  { %471 = vmatprep.mubr.msk.f32.mxu0 %vm663_vm0, %v664_v1  ;;  %478 = vmatprep.mubr.msk.f32.mxu1 %vm663_vm0, %v664_v1 }
  0x65   :  { %p629_p2 = pnand %p628_p1, %p622_p12 }
 0x135   :  { %v175_v17 = vpop.f32.mrb[0].mxu0  ;;  %v248_v18 = vpop.f32.mrb[0].mxu1 }
 0x136   :  { %v252_v19 = vmul.f32 %v175_v17, %v87_v3  ;;  %v253_v20 = vmul.f32 %v248_v18, %v88_v7  ;;  %v459_v21 = vpop.f32.mrb[1].mxu0  ;;  %v466_v22 = vpop.f32.mrb[1].mxu1 }
 0x138   :  { %472 = vmatmul.mubr.msk.f32.vlgmr.msra.gmra.mrb[2].mxu0 %vm105_vm1, %v252_v19  ;;  %479 = vmatmul.mubr.msk.f32.vlgmr.msra.gmra.mrb[2].mxu1 %vm105_vm1, %v253_v20 }
 0x20b   :  { %v327_v24 = vpop.f32.mrb[2].mxu0  ;;  %v400_v25 = vpop.f32.mrb[2].mxu1 }
 0x20c   :  { %v405_v26 = vmul.f32 %v404_v23, %v327_v24  ;;  %v406_v27 = vmul.f32 %v404_v23, %v400_v25  ;;  %v473_v28 = vpop.f32.mrb[3].mxu0  ;;  %v480_v29 = vpop.f32.mrb[3].mxu1 }
 0x20e   :  { %408 = vst.msk [vmem:[#allocation11] sm:$0x1] %vm407_vm2, %v405_v26  ;;  %409 = vst.msk [vmem:[#allocation11 + $0x1] sm:$0x1] %vm407_vm2, %v406_v27 }
 0x20f   :  { %632 = shalt.err (!%p629_p2)
}
 0x210   :  { %s633_s11 = scalar_lea.hbm %s790_s5, 32 }
 0x211   :  { %p634_p3 = scmp.ne.s32.totalorder %s790_s5, %s633_s11  ;;  %p637_p4 = scmp.lt.u32.totalorder %s633_s11, %s790_s5 }
 0x213   :  { %p639_p5 = pnand %p637_p4, %p634_p3 }
 0x215   :  { %642 = shalt.err (!%p639_p5)
}
 0x216   :  { %421 = dma.vmem_to_hbm [thread:$0]  %s416_s6, 32, %s790_s5, [#allocation4], %s656_s18, %s656_s18, %s657_s19  }
 0x217   :  { %649 = dma.done.wait [#allocation4], 32  }
 0x218   :  { %650 = vsyncadd [#allocation4], 4294967264 }
 0x219   :  { %425 = vsyncpa [#allocation3], 1 }
 0x21a   :  { %426 = vsyncpa [#allocation6], 1 }
 0x21b   :  { %427 = vsyncpa [#allocation9], 1 }
 0x21c   :  { %428 = vsyncpa [#allocation4], 1 }

</bundles_post_ra>
